<compile_context>
chip_gen: v7x
topology: tpu7x:2x2x1
jax: 0.10.0
libtpu: 0.0.40
codegen_flags: <defaults>
</compile_context>

<pallas_src>
import jax
import jax.numpy as jnp
from jax.experimental import pallas as pl
from jax.experimental.pallas import tpu as pltpu

_LANE = 128


# ---------------------------------------------------------------------------
# Kernels
# ---------------------------------------------------------------------------
def _ffn_resident_kernel(x_ref, w1_ref, b1_ref, w2_ref, b2_ref, o_ref):
    """Weights fully VMEM-resident; one (tm, C) token tile per grid step."""
    h = jnp.dot(x_ref[...], w1_ref[...], preferred_element_type=jnp.float32)
    h = jnp.maximum(h + b1_ref[...], 0.0)                      # f32 VPU path
    y = jnp.dot(h.astype(w2_ref.dtype), w2_ref[...],
                preferred_element_type=jnp.float32)
    o_ref[...] = (y + b2_ref[...]).astype(o_ref.dtype)


def _ffn_stream_kernel_f32out(x_ref, w1_ref, b1_ref, w2_ref, b2_ref, o_ref):
    """Hidden dim streamed in th-slices; the f32 output block IS the accumulator."""
    j = pl.program_id(1)
    h = jnp.dot(x_ref[...], w1_ref[...], preferred_element_type=jnp.float32)
    h = jnp.maximum(h + b1_ref[...], 0.0)
    part = jnp.dot(h.astype(w2_ref.dtype), w2_ref[...],
                   preferred_element_type=jnp.float32)

    @pl.when(j == 0)
    def _():
        o_ref[...] = part + b2_ref[...]

    @pl.when(j != 0)
    def _():
        o_ref[...] = o_ref[...] + part


def _ffn_stream_kernel_scratch(x_ref, w1_ref, b1_ref, w2_ref, b2_ref, o_ref,
                               acc_ref):
    """Streamed hidden dim with an f32 VMEM accumulator (non-f32 outputs)."""
    j = pl.program_id(1)

    @pl.when(j == 0)
    def _():
        acc_ref[...] = jnp.zeros_like(acc_ref)

    h = jnp.dot(x_ref[...], w1_ref[...], preferred_element_type=jnp.float32)
    h = jnp.maximum(h + b1_ref[...], 0.0)
    acc_ref[...] += jnp.dot(h.astype(w2_ref.dtype), w2_ref[...],
                            preferred_element_type=jnp.float32)

    @pl.when(j == pl.num_programs(1) - 1)
    def _():
        o_ref[...] = (acc_ref[...] + b2_ref[...]).astype(o_ref.dtype)


# ---------------------------------------------------------------------------
# Helpers
# ---------------------------------------------------------------------------
def _round_up(n, m):
    return ((n + m - 1) // m) * m


def _round_down(n, m):
    return max(m, (n // m) * m)


def _largest_aligned_divisor(dim, target, align):
    t = max(align, (min(target, dim) // align) * align)
    while t > align and dim % t:
        t -= align
    return t


def _vmem_limit_bytes():
    """Per-generation VMEM limit (v7x: 64 MiB physical, v5e/v6e: 128 MiB)."""
    cap = 64 * 1024 * 1024
    try:
        cap = int(pltpu.get_tpu_info().vmem_capacity_bytes)
    except Exception:
        pass
    return max(32 * 1024 * 1024, min(int(cap * 0.8), cap - 4 * 1024 * 1024))


def _spec(block_shape, index_map, buffers, use_buffered):
    """BlockSpec, optionally pinned to `buffers` pipeline buffers (Buffered(1)
    for operands whose block index never changes along the inner grid axis)."""
    if buffers is None or not use_buffered:
        return pl.BlockSpec(block_shape, index_map)
    try:
        return pl.BlockSpec(block_shape, index_map,
                            pipeline_mode=pl.Buffered(buffers))
    except Exception:  # pipeline_mode unsupported on this jax version
        return pl.BlockSpec(block_shape, index_map)


def _choose_config(M, H, C, mm_dtype, out_dtype, *, tm_target, th_target,
                   budget, path):
    """Pick execution path + (tm, th) tiles from a VMEM byte budget."""
    wb = jnp.dtype(mm_dtype).itemsize           # MXU operand bytes (x and W)
    ob = jnp.dtype(out_dtype).itemsize
    out_f32 = jnp.dtype(out_dtype) == jnp.dtype(jnp.float32)
    sub = 16 if min(wb, ob) < 4 else 8          # sublane alignment for row tiles

    resident_bytes = 2 * C * H * wb + 4 * (H + C)   # W1+W2+biases, 1 buffer each
    if path is None:
        path = "resident" if resident_bytes <= budget // 2 else "stream"

    def _cap_tm(tm):
        tm = max(sub, _round_down(int(tm), sub))
        tm = min(tm, _round_up(M, sub))
        if M >= 2 * sub:        # keep >= 2 row tiles so both v7x TCs get work
            tm = min(tm, _round_up(-(-M // 2), sub))
        return max(sub, tm)

    if path == "resident":
        per_row = 2 * C * (wb + ob) + H * (4 + wb)   # dbl-buffered x/out + hidden
        tm = _cap_tm(min(tm_target, (budget - resident_bytes) // per_row))
        return dict(path=path, tm=tm, th=None, Mp=_round_up(M, tm), Hp=H,
                    out_f32=out_f32)

    Hp = _round_up(H, _LANE)
    th = _largest_aligned_divisor(Hp, th_target, _LANE)
    per_row = (C * wb                                  # x, Buffered(1)
               + (C * 4 if out_f32 else C * (2 * ob + 4))  # out (+scratch)
               + th * (4 + wb))                        # hidden intermediates
    fixed = 4 * C * th * wb + 8 * (th + C)             # dbl-buffered W1/W2 tiles
    tm = _cap_tm(min(tm_target, (budget - fixed) // per_row))
    return dict(path=path, tm=tm, th=th, Mp=_round_up(M, tm), Hp=Hp,
                out_f32=out_f32)


# ---------------------------------------------------------------------------
# Parameters
# ---------------------------------------------------------------------------
def init_params(key, n_embd, dtype=jnp.float32):
    C = n_embd
    ks = jax.random.split(key, 4)
    norm = lambda k, shape: (0.02 * jax.random.normal(k, shape)).astype(dtype)
    return {
        "w1": norm(ks[0], (C, 4 * C)),
        "b1": norm(ks[1], (1, 4 * C)),
        "w2": norm(ks[2], (4 * C, C)),
        "b2": norm(ks[3], (1, C)),
    }


def prepare_params(params, compute_dtype=jnp.bfloat16):
    """One-time conversion of the MXU operands to the compute dtype.

    Call this ONCE, outside the per-call path: casting the weights inside the
    forward wrapper costs an extra full HBM pass over W1/W2 on every call.
    Biases stay f32 (bias-add / ReLU run on the VPU in f32)."""
    return {
        "w1": params["w1"].astype(compute_dtype),
        "b1": params["b1"].astype(jnp.float32),
        "w2": params["w2"].astype(compute_dtype),
        "b2": params["b2"].astype(jnp.float32),
    }


# ---------------------------------------------------------------------------
# Forward
# ---------------------------------------------------------------------------
def feedforward_forward(x, params, *, tm_target=512, th_target=256, path=None,
                        interpret=False):
    """x: (B, T, C). params: w1 (C,4C) / w2 (4C,C) already in the compute dtype
    (see prepare_params), b1 (1,4C) / b2 (1,C) in f32. Returns (B, T, C) in
    x.dtype. Dropout after the second Linear is identity at inference."""
    B, T, C = x.shape
    w1, b1, w2, b2 = params["w1"], params["b1"], params["w2"], params["b2"]
    H = w1.shape[1]                     # 4 * C
    M = B * T
    mm_dtype = w1.dtype                 # compute dtype is defined by the params
    out_dtype = x.dtype

    vmem_limit = _vmem_limit_bytes()
    cfg = _choose_config(M, H, C, mm_dtype, out_dtype,
                         tm_target=tm_target, th_target=th_target,
                         budget=int(0.85 * vmem_limit), path=path)
    tm, th, Mp, Hp = cfg["tm"], cfg["th"], cfg["Mp"], cfg["Hp"]

    # Activation-only cast (cheap vs. weights); pad tokens to the tile size.
    xm = x.reshape(M, C).astype(mm_dtype)
    if Mp != M:
        xm = jnp.pad(xm, ((0, Mp - M), (0, 0)))
    if Hp != H:                         # rare: 4C not a multiple of 128
        w1 = jnp.pad(w1, ((0, 0), (0, Hp - H)))
        b1 = jnp.pad(b1, ((0, 0), (0, Hp - H)))
        w2 = jnp.pad(w2, ((0, Hp - H), (0, 0)))
    b1 = b1.astype(jnp.float32)
    b2 = b2.astype(jnp.float32)

    wbytes = jnp.dtype(mm_dtype).itemsize
    cost = pl.CostEstimate(
        flops=4 * M * C * H,
        transcendentals=0,
        bytes_accessed=(M * C * (wbytes + jnp.dtype(out_dtype).itemsize)
                        + 2 * C * H * wbytes + 4 * (H + C)),
    )

    def run(use_buffered):
        if cfg["path"] == "resident":
            in_specs = [
                _spec((tm, C), lambda i: (i, 0), None, use_buffered),   # x
                _spec((C, Hp), lambda i: (0, 0), 1, use_buffered),      # W1 resident
                _spec((1, Hp), lambda i: (0, 0), 1, use_buffered),      # b1 resident
                _spec((Hp, C), lambda i: (0, 0), 1, use_buffered),      # W2 resident
                _spec((1, C), lambda i: (0, 0), 1, use_buffered),       # b2 resident
            ]
            out_specs = _spec((tm, C), lambda i: (i, 0), None, use_buffered)
            return pl.pallas_call(
                _ffn_resident_kernel,
                out_shape=jax.ShapeDtypeStruct((Mp, C), out_dtype),
                grid_spec=pltpu.PrefetchScalarGridSpec(
                    num_scalar_prefetch=0, grid=(Mp // tm,),
                    in_specs=in_specs, out_specs=out_specs),
                compiler_params=pltpu.CompilerParams(
                    dimension_semantics=("parallel",),
                    vmem_limit_bytes=vmem_limit),
                cost_estimate=cost,
                interpret=interpret,
            )(xm, w1, b1, w2, b2)

        # Streaming path: hidden dim tiled along an inner "arbitrary" axis.
        in_specs = [
            _spec((tm, C), lambda i, j: (i, 0), 1, use_buffered),   # x (j-revisited)
            _spec((C, th), lambda i, j: (0, j), None, use_buffered),  # W1 col tile
            _spec((1, th), lambda i, j: (0, j), None, use_buffered),  # b1 slice
            _spec((th, C), lambda i, j: (j, 0), None, use_buffered),  # W2 row tile
            _spec((1, C), lambda i, j: (0, 0), 1, use_buffered),    # b2 (constant)
        ]
        out_specs = _spec((tm, C), lambda i, j: (i, 0), 1, use_buffered)
        kernel = (_ffn_stream_kernel_f32out if cfg["out_f32"]
                  else _ffn_stream_kernel_scratch)
        scratch = [] if cfg["out_f32"] else [pltpu.VMEM((tm, C), jnp.float32)]
        return pl.pallas_call(
            kernel,
            out_shape=jax.ShapeDtypeStruct((Mp, C), out_dtype),
            grid_spec=pltpu.PrefetchScalarGridSpec(
                num_scalar_prefetch=0, grid=(Mp // tm, Hp // th),
                in_specs=in_specs, out_specs=out_specs,
                scratch_shapes=scratch),
            compiler_params=pltpu.CompilerParams(
                dimension_semantics=("parallel", "arbitrary"),
                vmem_limit_bytes=vmem_limit),
            cost_estimate=cost,
            interpret=interpret,
        )(xm, w1, b1, w2, b2)

    try:
        out = run(use_buffered=True)
    except Exception:
        # pipeline_mode=pl.Buffered(...) rejected on this jax/libtpu build:
        # fall back to default double-buffering (correct, uses a bit more VMEM).
        out = run(use_buffered=False)

    return out[:M].reshape(B, T, C)


def feedforward_reference(x, p):
    """Pure-JAX reference mirroring the PyTorch module in eval mode."""
    h = jnp.maximum(x @ p["w1"] + p["b1"][0], 0.0)
    return h @ p["w2"] + p["b2"][0]


# ---------------------------------------------------------------------------
# Demo / correctness checks
# ---------------------------------------------------------------------------
if __name__ == "__main__":
    # M = 40 (not a sublane multiple) exercises token padding; H = 4*64 = 256.
    B, T, n_embd = 2, 20, 64
    key = jax.random.PRNGKey(0)
    kx, kp = jax.random.split(key)
    x = jax.random.normal(kx, (B, T, n_embd), dtype=jnp.float32)

    params_f32 = init_params(kp, n_embd)
    ref = feedforward_reference(x, params_f32)

    # One-time weight conversion (perf review: no per-call weight casts).
    params_bf16 = prepare_params(params_f32, jnp.bfloat16)
    params_f32p = prepare_params(params_f32, jnp.float32)

    # 1) Default: bf16 MXU inputs, weights-resident fast path.
    out = jax.block_until_ready(feedforward_forward(x, params_bf16))
    assert out.shape == (B, T, n_embd) and out.dtype == x.dtype
    assert jnp.allclose(out, ref, atol=2e-2, rtol=2e-2), "bf16 resident mismatch"

    # 2) f32 MXU inputs, resident path (tight tolerance).
    out_f32 = jax.block_until_ready(feedforward_forward(x, params_f32p))
    assert jnp.allclose(out_f32, ref, atol=1e-4, rtol=1e-4), "f32 resident mismatch"

    # 3) Forced hidden-dim streaming path (f32 output accumulates in o_ref).
    out_s = jax.block_until_ready(
        feedforward_forward(x, params_bf16, path="stream", th_target=128))
    assert jnp.allclose(out_s, ref, atol=2e-2, rtol=2e-2), "stream f32-out mismatch"

    # 4) Forced streaming with a bf16 output (exercises the f32-scratch variant).
    out_b = jax.block_until_ready(
        feedforward_forward(x.astype(jnp.bfloat16), params_bf16,
                            path="stream", th_target=128))
    assert jnp.allclose(out_b.astype(jnp.float32), ref, atol=3e-2, rtol=3e-2), \
        "stream bf16-out mismatch"

    print("KERNEL_OK")
</pallas_src>

<mosaic_0001>
module attributes {stable_mosaic.version = 11 : i64} {
  func.func @_ffn_resident_kernel(%arg0: i32, %arg1: memref<32x64xbf16, #tpu.memory_space<vmem>>, %arg2: memref<64x256xbf16, #tpu.memory_space<vmem>>, %arg3: memref<1x256xf32, #tpu.memory_space<vmem>>, %arg4: memref<256x64xbf16, #tpu.memory_space<vmem>>, %arg5: memref<1x64xf32, #tpu.memory_space<vmem>>, %arg6: memref<32x64xf32, #tpu.memory_space<vmem>>) attributes {dimension_semantics = [#tpu.dimension_semantics<parallel>], iteration_bounds = array<i64: 2>, scalar_prefetch = 0 : i64, scratch_operands = 0 : i64, tpu.core_type = #tpu.core_type<tc>, window_params = [{transform_indices = @transform_0, window_bounds = array<i64: 32, 64>}, {pipeline_mode = #tpu.pipeline_mode<synchronous>, transform_indices = @transform_1, window_bounds = array<i64: 64, 256>}, {pipeline_mode = #tpu.pipeline_mode<synchronous>, transform_indices = @transform_2, window_bounds = array<i64: 1, 256>}, {pipeline_mode = #tpu.pipeline_mode<synchronous>, transform_indices = @transform_3, window_bounds = array<i64: 256, 64>}, {pipeline_mode = #tpu.pipeline_mode<synchronous>, transform_indices = @transform_4, window_bounds = array<i64: 1, 64>}, {transform_indices = @transform_5, window_bounds = array<i64: 32, 64>}]} {
    %c0 = arith.constant 0 : index
    %c0_0 = arith.constant 0 : index
    %0 = vector.load %arg1[%c0, %c0_0] : memref<32x64xbf16, #tpu.memory_space<vmem>>, vector<32x64xbf16>
    %c0_1 = arith.constant 0 : index
    %c0_2 = arith.constant 0 : index
    %1 = vector.load %arg2[%c0_1, %c0_2] : memref<64x256xbf16, #tpu.memory_space<vmem>>, vector<64x256xbf16>
    %cst = arith.constant dense<0.000000e+00> : vector<32x256xf32>
    %2 = tpu.matmul %0, %1, %cst {dimension_numbers = #tpu.dot_dimension_numbers<[1], [0], [0], [1], [0, 0, 1, 1], [], []>} : vector<32x64xbf16>, vector<64x256xbf16>, vector<32x256xf32> -> vector<32x256xf32>
    %c0_3 = arith.constant 0 : index
    %c0_4 = arith.constant 0 : index
    %3 = vector.load %arg3[%c0_3, %c0_4] : memref<1x256xf32, #tpu.memory_space<vmem>>, vector<1x256xf32>
    %4 = vector.broadcast %3 : vector<1x256xf32> to vector<32x256xf32>
    %5 = arith.addf %2, %4 : vector<32x256xf32>
    %cst_5 = arith.constant 0.000000e+00 : f32
    %6 = vector.broadcast %cst_5 : f32 to vector<32x256xf32>
    %7 = arith.maximumf %5, %6 : vector<32x256xf32>
    %8 = arith.truncf %7 : vector<32x256xf32> to vector<32x256xbf16>
    %c0_6 = arith.constant 0 : index
    %c0_7 = arith.constant 0 : index
    %9 = vector.load %arg4[%c0_6, %c0_7] : memref<256x64xbf16, #tpu.memory_space<vmem>>, vector<256x64xbf16>
    %cst_8 = arith.constant dense<0.000000e+00> : vector<32x64xf32>
    %10 = tpu.matmul %8, %9, %cst_8 {dimension_numbers = #tpu.dot_dimension_numbers<[1], [0], [0], [1], [0, 0, 1, 1], [], []>} : vector<32x256xbf16>, vector<256x64xbf16>, vector<32x64xf32> -> vector<32x64xf32>
    %c0_9 = arith.constant 0 : index
    %c0_10 = arith.constant 0 : index
    %11 = vector.load %arg5[%c0_9, %c0_10] : memref<1x64xf32, #tpu.memory_space<vmem>>, vector<1x64xf32>
    %12 = vector.broadcast %11 : vector<1x64xf32> to vector<32x64xf32>
    %13 = arith.addf %10, %12 : vector<32x64xf32>
    %c0_11 = arith.constant 0 : index
    %c0_12 = arith.constant 0 : index
    %14 = vector.load %arg6[%c0_11, %c0_12] : memref<32x64xf32, #tpu.memory_space<vmem>>, vector<32x64xf32>
    tpu.vector_store %arg6[%c0_11, %c0_12], %13 {strides = array<i32>} : memref<32x64xf32, #tpu.memory_space<vmem>>, vector<32x64xf32>,
    return
  }
  func.func @transform_0(%arg0: i32) -> (i32, i32) {
    %c0_i32 = arith.constant 0 : i32
    %c0_i32_0 = arith.constant 0 : i32
    return %arg0, %c0_i32 : i32, i32
  }
  func.func @transform_1(%arg0: i32) -> (i32, i32) {
    %c0_i32 = arith.constant 0 : i32
    %c0_i32_0 = arith.constant 0 : i32
    %c0_i32_1 = arith.constant 0 : i32
    return %c0_i32, %c0_i32_0 : i32, i32
  }
  func.func @transform_2(%arg0: i32) -> (i32, i32) {
    %c0_i32 = arith.constant 0 : i32
    %c0_i32_0 = arith.constant 0 : i32
    %c0_i32_1 = arith.constant 0 : i32
    return %c0_i32, %c0_i32_0 : i32, i32
  }
  func.func @transform_3(%arg0: i32) -> (i32, i32) {
    %c0_i32 = arith.constant 0 : i32
    %c0_i32_0 = arith.constant 0 : i32
    %c0_i32_1 = arith.constant 0 : i32
    return %c0_i32, %c0_i32_0 : i32, i32
  }
  func.func @transform_4(%arg0: i32) -> (i32, i32) {
    %c0_i32 = arith.constant 0 : i32
    %c0_i32_0 = arith.constant 0 : i32
    %c0_i32_1 = arith.constant 0 : i32
    return %c0_i32, %c0_i32_0 : i32, i32
  }
  func.func @transform_5(%arg0: i32) -> (i32, i32) {
    %c0_i32 = arith.constant 0 : i32
    %c0_i32_0 = arith.constant 0 : i32
    return %arg0, %c0_i32 : i32, i32
  }
}

module attributes {stable_mosaic.version = 11 : i64} {
  func.func @_ffn_resident_kernel(%arg0: i32, %arg1: memref<32x64xbf16, #tpu.memory_space<vmem>>, %arg2: memref<64x256xbf16, #tpu.memory_space<vmem>>, %arg3: memref<1x256xf32, #tpu.memory_space<vmem>>, %arg4: memref<256x64xbf16, #tpu.memory_space<vmem>>, %arg5: memref<1x64xf32, #tpu.memory_space<vmem>>, %arg6: memref<32x64xf32, #tpu.memory_space<vmem>>) attributes {dimension_semantics = [#tpu.dimension_semantics<parallel>], iteration_bounds = array<i64: 2>, scalar_prefetch = 0 : i64, scratch_operands = 0 : i64, tpu.core_type = #tpu.core_type<tc>, window_params = [{transform_indices = @transform_0, window_bounds = array<i64: 32, 64>}, {pipeline_mode = #tpu.pipeline_mode<synchronous>, transform_indices = @transform_1, window_bounds = array<i64: 64, 256>}, {pipeline_mode = #tpu.pipeline_mode<synchronous>, transform_indices = @transform_2, window_bounds = array<i64: 1, 256>}, {pipeline_mode = #tpu.pipeline_mode<synchronous>, transform_indices = @transform_3, window_bounds = array<i64: 256, 64>}, {pipeline_mode = #tpu.pipeline_mode<synchronous>, transform_indices = @transform_4, window_bounds = array<i64: 1, 64>}, {transform_indices = @transform_5, window_bounds = array<i64: 32, 64>}]} {
    %c0 = arith.constant 0 : index
    %c0_0 = arith.constant 0 : index
    %0 = vector.load %arg1[%c0, %c0_0] : memref<32x64xbf16, #tpu.memory_space<vmem>>, vector<32x64xbf16>
    %c0_1 = arith.constant 0 : index
    %c0_2 = arith.constant 0 : index
    %1 = vector.load %arg2[%c0_1, %c0_2] : memref<64x256xbf16, #tpu.memory_space<vmem>>, vector<64x256xbf16>
    %cst = arith.constant dense<0.000000e+00> : vector<32x256xf32>
    %2 = tpu.matmul %0, %1, %cst {dimension_numbers = #tpu.dot_dimension_numbers<[1], [0], [0], [1], [0, 0, 1, 1], [], []>} : vector<32x64xbf16>, vector<64x256xbf16>, vector<32x256xf32> -> vector<32x256xf32>
    %c0_3 = arith.constant 0 : index
    %c0_4 = arith.constant 0 : index
    %3 = vector.load %arg3[%c0_3, %c0_4] : memref<1x256xf32, #tpu.memory_space<vmem>>, vector<1x256xf32>
    %4 = vector.broadcast %3 : vector<1x256xf32> to vector<32x256xf32>
    %5 = arith.addf %2, %4 : vector<32x256xf32>
    %cst_5 = arith.constant 0.000000e+00 : f32
    %6 = vector.broadcast %cst_5 : f32 to vector<32x256xf32>
    %7 = arith.maximumf %5, %6 : vector<32x256xf32>
    %8 = arith.truncf %7 : vector<32x256xf32> to vector<32x256xbf16>
    %c0_6 = arith.constant 0 : index
    %c0_7 = arith.constant 0 : index
    %9 = vector.load %arg4[%c0_6, %c0_7] : memref<256x64xbf16, #tpu.memory_space<vmem>>, vector<256x64xbf16>
    %cst_8 = arith.constant dense<0.000000e+00> : vector<32x64xf32>
    %10 = tpu.matmul %8, %9, %cst_8 {dimension_numbers = #tpu.dot_dimension_numbers<[1], [0], [0], [1], [0, 0, 1, 1], [], []>} : vector<32x256xbf16>, vector<256x64xbf16>, vector<32x64xf32> -> vector<32x64xf32>
    %c0_9 = arith.constant 0 : index
    %c0_10 = arith.constant 0 : index
    %11 = vector.load %arg5[%c0_9, %c0_10] : memref<1x64xf32, #tpu.memory_space<vmem>>, vector<1x64xf32>
    %12 = vector.broadcast %11 : vector<1x64xf32> to vector<32x64xf32>
    %13 = arith.addf %10, %12 : vector<32x64xf32>
    %c0_11 = arith.constant 0 : index
    %c0_12 = arith.constant 0 : index
    %14 = vector.load %arg6[%c0_11, %c0_12] : memref<32x64xf32, #tpu.memory_space<vmem>>, vector<32x64xf32>
    tpu.vector_store %arg6[%c0_11, %c0_12], %13 {strides = array<i32>} : memref<32x64xf32, #tpu.memory_space<vmem>>, vector<32x64xf32>,
    return
  }
  func.func @transform_0(%arg0: i32) -> (i32, i32) {
    %c0_i32 = arith.constant 0 : i32
    %c0_i32_0 = arith.constant 0 : i32
    return %arg0, %c0_i32 : i32, i32
  }
  func.func @transform_1(%arg0: i32) -> (i32, i32) {
    %c0_i32 = arith.constant 0 : i32
    %c0_i32_0 = arith.constant 0 : i32
    %c0_i32_1 = arith.constant 0 : i32
    return %c0_i32, %c0_i32_0 : i32, i32
  }
  func.func @transform_2(%arg0: i32) -> (i32, i32) {
    %c0_i32 = arith.constant 0 : i32
    %c0_i32_0 = arith.constant 0 : i32
    %c0_i32_1 = arith.constant 0 : i32
    return %c0_i32, %c0_i32_0 : i32, i32
  }
  func.func @transform_3(%arg0: i32) -> (i32, i32) {
    %c0_i32 = arith.constant 0 : i32
    %c0_i32_0 = arith.constant 0 : i32
    %c0_i32_1 = arith.constant 0 : i32
    return %c0_i32, %c0_i32_0 : i32, i32
  }
  func.func @transform_4(%arg0: i32) -> (i32, i32) {
    %c0_i32 = arith.constant 0 : i32
    %c0_i32_0 = arith.constant 0 : i32
    %c0_i32_1 = arith.constant 0 : i32
    return %c0_i32, %c0_i32_0 : i32, i32
  }
  func.func @transform_5(%arg0: i32) -> (i32, i32) {
    %c0_i32 = arith.constant 0 : i32
    %c0_i32_0 = arith.constant 0 : i32
    return %arg0, %c0_i32 : i32, i32
  }
}

</mosaic_0001>

<bundles_post_ra>
// kernel: tpu_custom_call.1
= control target key start
LH: loop header
LB: loop body
LE: loop exit
PB: predicated region body
PF: predicated region fallthrough
CT: control target
= control target key end

     0   :  { %10 = vsyncpa [#allocation3], 0  ;;  %s1063_s0 = inlined_call_operand.vmem [shape: bf16[64,64], index: 0, kind: input, shape index: {}]   ;;  %s1064_s1 = inlined_call_operand.vmem [shape: bf16[64,256], index: 1, kind: input, shape index: {}]   ;;  %s1065_s2 = inlined_call_operand.vmem [shape: f32[1,256], index: 2, kind: input, shape index: {}]   ;;  %s1066_s3 = inlined_call_operand.vmem [shape: bf16[256,64], index: 3, kind: input, shape index: {}]   ;;  %s1067_s4 = inlined_call_operand.vmem [shape: f32[1,64], index: 4, kind: input, shape index: {}]   ;;  %s1068_s5 = inlined_call_operand.hbm [shape: f32[64,64], index: 5, kind: output, shape index: {}]  }
   0x1   :  { %12 = vsyncpa [#allocation3 + $0x1], 0  ;;  %s877_s18 = smov 0   ;;  %s879_s19 = smov 0  }
   0x2   :  { %s881_s20 = smov 0   ;;  %s883_s21 = smov 0  }
   0x3 LB: > { %s898_s22 = sadd.s32 4294967295, %s841_s21   ;;  %s637_s23 = sadd.s32 4294967294, %s841_s21   ;;  %s841_s21 = sphi %s883_s21, %s1074_s21   ;;  %s837_s20 = sphi %s881_s20, %s1073_s20   ;;  %s833_s19 = sphi %s879_s19, %s1072_s19   ;;  %s829_s18 = sphi %s877_s18, %s1071_s18  }
   0x4   : > { %s902_s24 = sadd.s32 1, %s841_s21   ;;  %s135_s25 = sadd.s32 1, %s837_s20 }
   0x5   : > { %s132_s26 = ssub.s32 %s841_s21, %s902_s24  ;;  %p145_p0 = scmp.ne.s32.totalorder %s837_s20, %s833_s19 }
   0x6   : > { %p133_p1 = scmp.eq.s32.totalorder %s132_s26, 0  ;;  %p146_p2 = scmp.eq.s32.totalorder %s898_s22, 1 }
   0x7   : > { %p151_p3 = scmp.ne.s32.totalorder %s833_s19, %s829_s18  ;;  %p152_p4 = scmp.eq.s32.totalorder %s637_s23, 1 }
   0x8   : > { %s913_s27 = scalar_select %p133_p1, %s837_s20, %s135_s25  }
   0x9   : > { %p915_p5 = por %p146_p2, %p145_p0  ;;  %p919_p6 = por %p152_p4, %p151_p3 }
   0xa   : > { %p640_p7 = scmp.ge.s32.totalorder %s841_s21, 1  ;;  %p191_p8 = scmp.lt.s32.totalorder %s841_s21, 3 }
   0xc   : > { %p192_p9 = pnand %p640_p7, %p191_p8 }
   0xd   : > { %v749_v0 = vld [vmem:[%s1064_s1 + $0x4] ss:$8 sps:$4 sm:$0xff] (!%p192_p9)   ;;  %s642_s7 = sshll.u32 (!%p192_p9), %s898_s22, 2  ;;  %v751_v1 = vld [vmem:[%s1064_s1] ss:$8 sps:$4 sm:$0xff] (!%p192_p9)   ;;  %v843_v2 = vmov (!%p192_p9), 0   ;;  %v241_v27 = vlaneseq (!%p192_p9) }
   0xe   : > { %195 = sbr.rel (%p192_p9) target bundleno = 494 (0x1ee), region = 40  ;;  %340 = vmatprep.mubr.bf16.mxu0 (!%p192_p9), %v843_v2  ;;  %p220_p10 = scmp.lt.s32.totalorder (!%p192_p9), %s642_s7, 7  ;;  %308 = vmatprep.subr.bf16.mxu0 (!%p192_p9), %v749_v0  ;;  %v752_v3 = vld [vmem:[%s1064_s1 + $0x14] ss:$8 sps:$4 sm:$0xff] (!%p192_p9)   ;;  %v754_v4 = vld [vmem:[%s1064_s1 + $0x10] ss:$8 sps:$4 sm:$0xff] (!%p192_p9)  }
   0xf   : > { %309 = vmatpush1.bf16.msra.mxu0 (!%p192_p9), %v751_v1  ;;  %v755_v5 = vld [vmem:[%s1064_s1 + $0x24] ss:$8 sps:$4 sm:$0xff] (!%p192_p9)   ;;  %v757_v7 = vld [vmem:[%s1064_s1 + $0x20] ss:$8 sps:$4 sm:$0xff] (!%p192_p9)   ;;  %v758_v8 = vld [vmem:[%s1064_s1 + $0x34] ss:$8 sps:$4 sm:$0xff] (!%p192_p9)  }
  0x10   : > { %310 = vmatprep.subr.bf16.mxu0 (!%p192_p9), %v752_v3  ;;  %v763_v6 = vld [vmem:[%s1066_s3 + $0x40] sm:$0xff] (!%p192_p9)   ;;  %v760_v9 = vld [vmem:[%s1064_s1 + $0x30] ss:$8 sps:$4 sm:$0xff] (!%p192_p9)   ;;  %v765_v11 = vld [vmem:[%s1066_s3 + $0x48] sm:$0xff] (!%p192_p9)   ;;  %vm301_vm0 = vcmask (!%p192_p9), 523264   ;;  %v242_v28 = vshrl.u32 (!%p192_p9), %v241_v27, 7 }
  0x11   : > { %679 = vmatprep.subr.bf16.mxu1 (!%p192_p9), %v763_v6  ;;  %v764_v10 = vld [vmem:[%s1066_s3] sm:$0xff] (!%p192_p9)   ;;  %v766_v12 = vld [vmem:[%s1066_s3 + $0x8] sm:$0xff] (!%p192_p9)   ;;  %v767_v13 = vld [vmem:[%s1066_s3 + $0x50] sm:$0xff] (!%p192_p9)   ;;  %s216_s13 = sand.u32 (!%p192_p9), 1, %s833_s19   ;;  %s844_s9 = smov (!%p192_p9), [#allocation2]  }
  0x12   : > { %680 = vmatpush3.bf16.msra.mxu1 (!%p192_p9), %v764_v10  ;;  %v768_v15 = vld [vmem:[%s1066_s3 + $0x10] sm:$0xff] (!%p192_p9)   ;;  %v769_v16 = vld [vmem:[%s1066_s3 + $0x58] sm:$0xff] (!%p192_p9)   ;;  %v771_v18 = vld [vmem:[%s1066_s3 + $0x60] sm:$0xff] (!%p192_p9)   ;;  %v243_v29 = vsub.s32 (!%p192_p9), 0, %v242_v28  ;;  %v247_v31 = vsub.s32 (!%p192_p9), 1, %v242_v28  ;;  %s641_s14 = sshll.u32 (!%p192_p9), %s216_s13, 5 }
  0x13   : > { %311 = vmatpush1.bf16.msra.mxu0 (!%p192_p9), %v754_v4  ;;  %681 = vmatprep.subr.bf16.mxu1 (!%p192_p9), %v765_v11  ;;  %v770_v17 = vld [vmem:[%s1066_s3 + $0x18] sm:$0xff] (!%p192_p9)   ;;  %v772_v20 = vld [vmem:[%s1066_s3 + $0x20] sm:$0xff] (!%p192_p9)   ;;  %v773_v21 = vld [vmem:[%s1066_s3 + $0x68] sm:$0xff] (!%p192_p9)   ;;  %s218_s17 = scalar_lea.vmem (!%p192_p9), [#allocation2], %s641_s14  ;;  %s1022_s8 = scalar_lea.sflag (!%p192_p9), [#allocation3], %s216_s13 }
  0x14   : > { %312 = vmatprep.subr.bf16.mxu0 (!%p192_p9), %v755_v5  ;;  %v774_v22 = vld [vmem:[%s1066_s3 + $0x28] sm:$0xff] (!%p192_p9)   ;;  %v775_v23 = vld [vmem:[%s1066_s3 + $0x70] sm:$0xff] (!%p192_p9)   ;;  %v777_v25 = vld [vmem:[%s1066_s3 + $0x78] sm:$0xff] (!%p192_p9)   ;;  %s575_s23 = sshll.u32 (!%p192_p9), %s218_s17, 4  ;;  %s783_s10 = sshll.u32 (!%p192_p9), %s844_s9, 4  ;;  %s1018_s23 = int_to_ptr.vmem [resolvable:$true] %s575_s23  ;;  %s784_s10 = int_to_ptr.vmem [resolvable:$false] %s783_s10 }
  0x15   : > { %s1076_s7 = smov (!%p220_p10, %s642_s7), 7  ;;  %v776_v24 = vld [vmem:[%s1066_s3 + $0x30] sm:$0xff]   ;;  %v778_v26 = vld [vmem:[%s1066_s3 + $0x38] sm:$0xff]   ;;  %v239_v30 = vld [vmem:[%s1065_s2] sm:$0x3]  ;;  %p786_p0 = scmp.lt.s32.totalorder %s1018_s23, %s784_s10 }
  0x16   : > { %s643_s16 = sshll.u32 %s1076_s7, 2  ;;  %682 = vmatpush3.bf16.msra.mxu1 %v766_v12  ;;  %v244_v32 = vrot.slane %v239_v30, %v243_v29  ;;  %v248_v33 = vrot.slane %v239_v30, %v247_v31  ;;  %v656_v63 = vld [vmem:[%s1067_s4] ss:$0 sm:$0xff]  ;;  %s785_s7 = scalar_lea.vmem %s784_s10, 1024 }
  0x17   : > { %s223_s30 = scalar_lea.vmem %s1063_s0, %s643_s16  ;;  %313 = vmatpush1.bf16.msra.mxu0 %v757_v7  ;;  %683 = vmatprep.subr.bf16.mxu1 %v767_v13 }
  0x18   : > { %314 = vmatprep.subr.bf16.mxu0 %v758_v8  ;;  %v761_v14 = vld [vmem:[%s223_s30] sm:$0xff]   ;;  %v762_v19 = vld [vmem:[%s223_s30 + $0x8] sm:$0xff]   ;;  %s678_s30 = sshll.u32 %s898_s22, 9  ;;  %s779_s22 = scalar_lea.vmem %s1018_s23, 512 }
  0x19   : > { %s1016_s6 = scalar_lea.hbm %s1068_s5, %s678_s30  ;;  %p780_p11 = scmp.ne.s32.totalorder %s1018_s23, %s779_s22 }
  0x1a   : > { %684 = vmatpush3.bf16.msra.mxu1 %v768_v15  ;;  %p787_p1 = scmp.lt.s32.totalorder %s785_s7, %s779_s22 }
  0x1b   : > { %315 = vmatpush1.bf16.msra.mxu0 %v760_v9  ;;  %685 = vmatprep.subr.bf16.mxu1 %v769_v16  ;;  %p781_p12 = pnand %p780_p11, %p915_p5 }
  0x1c   : > { %p788_p2 = por %p787_p1, %p786_p0 }
  0x1d   : > { %p782_p13 = pneg %p781_p12 }
  0x1e   : > { %654 = vmatmul.mubr.msk.bf16.vlgmr.msra.gmra.mrb[0].mxu0 %vm301_vm0, %v761_v14  ;;  %686 = vmatpush3.bf16.msra.mxu1 %v770_v17 }
  0x1f   : > { %350 = vmatprep.mubr.bf16.mxu0 %v843_v2  ;;  %687 = vmatprep.subr.bf16.mxu1 %v771_v18  ;;  %p789_p3 = pnand %p788_p2, %p782_p13 }
  0x22   : > { %688 = vmatpush3.bf16.msra.mxu1 %v772_v20 }
  0x23   : > { %689 = vmatprep.subr.bf16.mxu1 %v773_v21 }
  0x26   : > { %655 = vmatmul.mubr.msk.bf16.gmra.mrb[4].mxu0 %vm301_vm0, %v762_v19  ;;  %690 = vmatpush3.bf16.msra.mxu1 %v774_v22 }
  0x27   : > { %691 = vmatprep.subr.bf16.mxu1 %v775_v23 }
  0x2a   : > { %692 = vmatpush3.bf16.msra.mxu1 %v776_v24 }
  0x2b   : > { %693 = vmatprep.subr.bf16.mxu1 %v777_v25 }
  0x2e   : > { %694 = vmatpush3.bf16.msra.mxu1 %v778_v26 }
  0xf1   : > { %v342_v34 = vpop.f32.mrb[0].mxu0 }
  0xf2   : > { %v343_v35 = vadd.f32 %v342_v34, %v244_v32  ;;  %v344_v36 = vpop.f32.mrb[1].mxu0 }
  0xf3   : > { %v345_v37 = vadd.f32 %v344_v36, %v248_v33  ;;  %v346_v38 = vpop.f32.mrb[2].mxu0 }
  0xf4   : > { %v347_v39 = vadd.f32 %v346_v38, %v244_v32  ;;  %v348_v40 = vpop.f32.mrb[3].mxu0  ;;  %v361_v42 = vmax.f32 %v343_v35, 0.0 }
  0xf5   : > { %v349_v41 = vadd.f32 %v348_v40, %v248_v33  ;;  %v362_v44 = vmax.f32 %v345_v37, 0.0 }
  0xf6   : > { %v363_v43 = vmax.f32 %v347_v39, 0.0 }
  0xf7   : > { %v364_v45 = vmax.f32 %v349_v41, 0.0 }
  0xf8   : > { %v369_v46 = vpack.c.bf16 %v363_v43, %v361_v42 }
  0xf9   : > { %v352_v47 = vpop.f32.mrb[4].mxu0  ;;  %v370_v48 = vpack.c.bf16 %v364_v45, %v362_v44 }
  0xfa   : > { %v353_v49 = vadd.f32 %v352_v47, %v244_v32  ;;  %v354_v50 = vpop.f32.mrb[5].mxu0 }
  0xfb   : > { %v355_v51 = vadd.f32 %v354_v50, %v248_v33  ;;  %v356_v52 = vpop.f32.mrb[6].mxu0  ;;  %540 = vmatprep.mubr.bf16.mxu1 %v370_v48 }
  0xfc   : > { %v357_v53 = vadd.f32 %v356_v52, %v244_v32  ;;  %v358_v54 = vpop.f32.mrb[7].mxu0  ;;  %541 = vmatmul.mubr.bf16.vlgmr.msra.gmra.mrb[0].mxu1 %v369_v46  ;;  %v365_v56 = vmax.f32 %v353_v49, 0.0 }
  0xfd   : > { %v359_v55 = vadd.f32 %v358_v54, %v248_v33  ;;  %v366_v58 = vmax.f32 %v355_v51, 0.0 }
  0xfe   : > { %v367_v57 = vmax.f32 %v357_v53, 0.0 }
  0xff   : > { %v368_v59 = vmax.f32 %v359_v55, 0.0 }
 0x100   : > { %v371_v60 = vpack.c.bf16 %v367_v57, %v365_v56 }
 0x101   : > { %v372_v61 = vpack.c.bf16 %v368_v59, %v366_v58 }
 0x103   : > { %548 = vmatprep.mubr.bf16.mxu1 %v372_v61 }
 0x104   : > { %549 = vmatmul.mubr.bf16.gmra.mrb[4].mxu1 %v371_v60 }
 0x1cf   : > { %v695_v62 = vpop.f32.mrb[0].mxu1 }
 0x1d0   : > { %v696_v0 = vpop.f32.mrb[1].mxu1 }
 0x1d1   : > { %v697_v1 = vadd.f32 %v696_v0, %v695_v62  ;;  %v698_v2 = vpop.f32.mrb[2].mxu1 }
 0x1d2   : > { %v699_v3 = vpop.f32.mrb[3].mxu1 }
 0x1d3   : > { %v543_v4 = vadd.f32 %v697_v1, %v656_v63  ;;  %v700_v5 = vadd.f32 %v699_v3, %v698_v2 }
 0x1d5   : > { %557 = vst.msk [vmem:[%s218_s17] sm:$0xff] %vm301_vm0, %v543_v4  ;;  %v546_v6 = vadd.f32 %v700_v5, %v656_v63 }
 0x1d7   : > { %558 = vst.msk [vmem:[%s218_s17 + $0x8] sm:$0xff] %vm301_vm0, %v546_v6  ;;  %v701_v7 = vpop.f32.mrb[4].mxu1 }
 0x1d8   : > { %v702_v8 = vpop.f32.mrb[5].mxu1 }
 0x1d9   : > { %v703_v9 = vadd.f32 %v702_v8, %v701_v7  ;;  %v704_v10 = vpop.f32.mrb[6].mxu1 }
 0x1da   : > { %v705_v11 = vpop.f32.mrb[7].mxu1 }
 0x1db   : > { %v551_v12 = vadd.f32 %v703_v9, %v656_v63  ;;  %v706_v13 = vadd.f32 %v705_v11, %v704_v10 }
 0x1dd   : > { %559 = vst.msk [vmem:[%s218_s17 + $0x10] sm:$0xff] %vm301_vm0, %v551_v12  ;;  %v554_v14 = vadd.f32 %v706_v13, %v656_v63 }
 0x1df   : > { %560 = vst.msk [vmem:[%s218_s17 + $0x18] sm:$0xff] %vm301_vm0, %v554_v14 }
 0x1e0   : > { %792 = shalt.err (!%p789_p3)
}
 0x1e1   : > { %s793_s11 = scalar_lea.hbm %s1016_s6, 512  ;;  %s797_s14 = scalar_lea.hbm %s1068_s5, 1024 }
 0x1e2   : > { %p794_p4 = scmp.ne.s32.totalorder %s1016_s6, %s793_s11  ;;  %p798_p9 = scmp.lt.u32.totalorder %s1016_s6, %s1068_s5 }
 0x1e3   : > { %p799_p10 = scmp.lt.u32.totalorder %s797_s14, %s793_s11  ;;  %p801_p12 = scmp.lt.u32.totalorder %s793_s11, %s1016_s6 }
 0x1e4   : > { %p795_p7 = pnand %p794_p4, %p915_p5 }
 0x1e5   : > { %p800_p11 = por %p799_p10, %p798_p9 }
 0x1e6   : > { %p796_p8 = pneg %p795_p7 }
 0x1e7   : > { %p802_p13 = por %p801_p12, %p800_p11 }
 0x1e9   : > { %p803_p0 = pnand %p802_p13, %p796_p8 }
 0x1eb   : > { %806 = shalt.err (!%p803_p0)
}
 0x1ec   : > { %s845_s17 = smov 128   ;;  %s846_s30 = smov 8  }
 0x1ed   : > { %707 = dma.vmem_to_hbm [thread:$0]  (%p915_p5), %s1018_s23, 512, %s1016_s6, %s1022_s8, %s845_s17, %s845_s17, %s846_s30  }
 0x1ee PF: > { %p713_p1 = scmp.ge.s32.totalorder %s841_s21, 2  ;;  %s590_s25 = sand.u32 1, %s829_s18  }
 0x1ef   : > { %s591_s26 = scalar_lea.sflag [#allocation3], %s590_s25 }
 0x1f0   : > { %p710_p2 = pnand %p713_p1, %p919_p6 }
 0x1f2   : > { %824 = dma.done.wait (!%p710_p2), %s591_s26, 512  }
 0x1f3   : > { %826 = vsyncadd (!%p710_p2), %s591_s26, 4294966784  ;;  %p15_p3 = scmp.ge.s32.totalorder %s902_s24, 4   ;;  %s1071_s18 = smov %s833_s19 }
 0x1f4   : > { %s1072_s19 = smov %s837_s20  ;;  %s1073_s20 = smov %s913_s27 }
 0x1f5   : > { %s1074_s21 = smov %s902_s24  ;;  %17 = sbr.rel (!%p15_p3) target bundleno = 3 (0x3), region = 75 }
 0x1fc   :  { %596 = vsyncpa [#allocation3], 1 }
 0x1fd   :  { %598 = vsyncpa [#allocation3 + $0x1], 1 }

// kernel: tpu_custom_call.1
= control target key start
LH: loop header
LB: loop body
LE: loop exit
PB: predicated region body
PF: predicated region fallthrough
CT: control target
= control target key end

     0   :  { %10 = vsyncpa [#allocation3], 0  ;;  %s1063_s0 = inlined_call_operand.vmem [shape: bf16[64,64], index: 0, kind: input, shape index: {}]   ;;  %s1064_s1 = inlined_call_operand.vmem [shape: bf16[64,256], index: 1, kind: input, shape index: {}]   ;;  %s1065_s2 = inlined_call_operand.vmem [shape: f32[1,256], index: 2, kind: input, shape index: {}]   ;;  %s1066_s3 = inlined_call_operand.vmem [shape: bf16[256,64], index: 3, kind: input, shape index: {}]   ;;  %s1067_s4 = inlined_call_operand.vmem [shape: f32[1,64], index: 4, kind: input, shape index: {}]   ;;  %s1068_s5 = inlined_call_operand.hbm [shape: f32[64,64], index: 5, kind: output, shape index: {}]  }
   0x1   :  { %12 = vsyncpa [#allocation3 + $0x1], 0  ;;  %s877_s18 = smov 0   ;;  %s879_s19 = smov 0  }
   0x2   :  { %s881_s20 = smov 0   ;;  %s883_s21 = smov 0  }
   0x3 LB: > { %s898_s22 = sadd.s32 4294967295, %s841_s21   ;;  %s637_s23 = sadd.s32 4294967294, %s841_s21   ;;  %s841_s21 = sphi %s883_s21, %s1074_s21   ;;  %s837_s20 = sphi %s881_s20, %s1073_s20   ;;  %s833_s19 = sphi %s879_s19, %s1072_s19   ;;  %s829_s18 = sphi %s877_s18, %s1071_s18  }
   0x4   : > { %s902_s24 = sadd.s32 1, %s841_s21   ;;  %s135_s25 = sadd.s32 1, %s837_s20 }
   0x5   : > { %s132_s26 = ssub.s32 %s841_s21, %s902_s24  ;;  %p145_p0 = scmp.ne.s32.totalorder %s837_s20, %s833_s19 }
   0x6   : > { %p133_p1 = scmp.eq.s32.totalorder %s132_s26, 0  ;;  %p146_p2 = scmp.eq.s32.totalorder %s898_s22, 1 }
   0x7   : > { %p151_p3 = scmp.ne.s32.totalorder %s833_s19, %s829_s18  ;;  %p152_p4 = scmp.eq.s32.totalorder %s637_s23, 1 }
   0x8   : > { %s913_s27 = scalar_select %p133_p1, %s837_s20, %s135_s25  }
   0x9   : > { %p915_p5 = por %p146_p2, %p145_p0  ;;  %p919_p6 = por %p152_p4, %p151_p3 }
   0xa   : > { %p640_p7 = scmp.ge.s32.totalorder %s841_s21, 1  ;;  %p191_p8 = scmp.lt.s32.totalorder %s841_s21, 3 }
   0xc   : > { %p192_p9 = pnand %p640_p7, %p191_p8 }
   0xd   : > { %v749_v0 = vld [vmem:[%s1064_s1 + $0x4] ss:$8 sps:$4 sm:$0xff] (!%p192_p9)   ;;  %s642_s7 = sshll.u32 (!%p192_p9), %s898_s22, 2  ;;  %v751_v1 = vld [vmem:[%s1064_s1] ss:$8 sps:$4 sm:$0xff] (!%p192_p9)   ;;  %v843_v2 = vmov (!%p192_p9), 0   ;;  %v241_v27 = vlaneseq (!%p192_p9) }
   0xe   : > { %195 = sbr.rel (%p192_p9) target bundleno = 494 (0x1ee), region = 40  ;;  %340 = vmatprep.mubr.bf16.mxu0 (!%p192_p9), %v843_v2  ;;  %p220_p10 = scmp.lt.s32.totalorder (!%p192_p9), %s642_s7, 7  ;;  %308 = vmatprep.subr.bf16.mxu0 (!%p192_p9), %v749_v0  ;;  %v752_v3 = vld [vmem:[%s1064_s1 + $0x14] ss:$8 sps:$4 sm:$0xff] (!%p192_p9)   ;;  %v754_v4 = vld [vmem:[%s1064_s1 + $0x10] ss:$8 sps:$4 sm:$0xff] (!%p192_p9)  }
   0xf   : > { %309 = vmatpush1.bf16.msra.mxu0 (!%p192_p9), %v751_v1  ;;  %v755_v5 = vld [vmem:[%s1064_s1 + $0x24] ss:$8 sps:$4 sm:$0xff] (!%p192_p9)   ;;  %v757_v7 = vld [vmem:[%s1064_s1 + $0x20] ss:$8 sps:$4 sm:$0xff] (!%p192_p9)   ;;  %v758_v8 = vld [vmem:[%s1064_s1 + $0x34] ss:$8 sps:$4 sm:$0xff] (!%p192_p9)  }
  0x10   : > { %310 = vmatprep.subr.bf16.mxu0 (!%p192_p9), %v752_v3  ;;  %v763_v6 = vld [vmem:[%s1066_s3 + $0x40] sm:$0xff] (!%p192_p9)   ;;  %v760_v9 = vld [vmem:[%s1064_s1 + $0x30] ss:$8 sps:$4 sm:$0xff] (!%p192_p9)   ;;  %v765_v11 = vld [vmem:[%s1066_s3 + $0x48] sm:$0xff] (!%p192_p9)   ;;  %vm301_vm0 = vcmask (!%p192_p9), 523264   ;;  %v242_v28 = vshrl.u32 (!%p192_p9), %v241_v27, 7 }
  0x11   : > { %679 = vmatprep.subr.bf16.mxu1 (!%p192_p9), %v763_v6  ;;  %v764_v10 = vld [vmem:[%s1066_s3] sm:$0xff] (!%p192_p9)   ;;  %v766_v12 = vld [vmem:[%s1066_s3 + $0x8] sm:$0xff] (!%p192_p9)   ;;  %v767_v13 = vld [vmem:[%s1066_s3 + $0x50] sm:$0xff] (!%p192_p9)   ;;  %s216_s13 = sand.u32 (!%p192_p9), 1, %s833_s19   ;;  %s844_s9 = smov (!%p192_p9), [#allocation2]  }
  0x12   : > { %680 = vmatpush3.bf16.msra.mxu1 (!%p192_p9), %v764_v10  ;;  %v768_v15 = vld [vmem:[%s1066_s3 + $0x10] sm:$0xff] (!%p192_p9)   ;;  %v769_v16 = vld [vmem:[%s1066_s3 + $0x58] sm:$0xff] (!%p192_p9)   ;;  %v771_v18 = vld [vmem:[%s1066_s3 + $0x60] sm:$0xff] (!%p192_p9)   ;;  %v243_v29 = vsub.s32 (!%p192_p9), 0, %v242_v28  ;;  %v247_v31 = vsub.s32 (!%p192_p9), 1, %v242_v28  ;;  %s641_s14 = sshll.u32 (!%p192_p9), %s216_s13, 5 }
  0x13   : > { %311 = vmatpush1.bf16.msra.mxu0 (!%p192_p9), %v754_v4  ;;  %681 = vmatprep.subr.bf16.mxu1 (!%p192_p9), %v765_v11  ;;  %v770_v17 = vld [vmem:[%s1066_s3 + $0x18] sm:$0xff] (!%p192_p9)   ;;  %v772_v20 = vld [vmem:[%s1066_s3 + $0x20] sm:$0xff] (!%p192_p9)   ;;  %v773_v21 = vld [vmem:[%s1066_s3 + $0x68] sm:$0xff] (!%p192_p9)   ;;  %s218_s17 = scalar_lea.vmem (!%p192_p9), [#allocation2], %s641_s14  ;;  %s1022_s8 = scalar_lea.sflag (!%p192_p9), [#allocation3], %s216_s13 }
  0x14   : > { %312 = vmatprep.subr.bf16.mxu0 (!%p192_p9), %v755_v5  ;;  %v774_v22 = vld [vmem:[%s1066_s3 + $0x28] sm:$0xff] (!%p192_p9)   ;;  %v775_v23 = vld [vmem:[%s1066_s3 + $0x70] sm:$0xff] (!%p192_p9)   ;;  %v777_v25 = vld [vmem:[%s1066_s3 + $0x78] sm:$0xff] (!%p192_p9)   ;;  %s575_s23 = sshll.u32 (!%p192_p9), %s218_s17, 4  ;;  %s783_s10 = sshll.u32 (!%p192_p9), %s844_s9, 4  ;;  %s1018_s23 = int_to_ptr.vmem [resolvable:$true] %s575_s23  ;;  %s784_s10 = int_to_ptr.vmem [resolvable:$false] %s783_s10 }
  0x15   : > { %s1076_s7 = smov (!%p220_p10, %s642_s7), 7  ;;  %v776_v24 = vld [vmem:[%s1066_s3 + $0x30] sm:$0xff]   ;;  %v778_v26 = vld [vmem:[%s1066_s3 + $0x38] sm:$0xff]   ;;  %v239_v30 = vld [vmem:[%s1065_s2] sm:$0x3]  ;;  %p786_p0 = scmp.lt.s32.totalorder %s1018_s23, %s784_s10 }
  0x16   : > { %s643_s16 = sshll.u32 %s1076_s7, 2  ;;  %682 = vmatpush3.bf16.msra.mxu1 %v766_v12  ;;  %v244_v32 = vrot.slane %v239_v30, %v243_v29  ;;  %v248_v33 = vrot.slane %v239_v30, %v247_v31  ;;  %v656_v63 = vld [vmem:[%s1067_s4] ss:$0 sm:$0xff]  ;;  %s785_s7 = scalar_lea.vmem %s784_s10, 1024 }
  0x17   : > { %s223_s30 = scalar_lea.vmem %s1063_s0, %s643_s16  ;;  %313 = vmatpush1.bf16.msra.mxu0 %v757_v7  ;;  %683 = vmatprep.subr.bf16.mxu1 %v767_v13 }
  0x18   : > { %314 = vmatprep.subr.bf16.mxu0 %v758_v8  ;;  %v761_v14 = vld [vmem:[%s223_s30] sm:$0xff]   ;;  %v762_v19 = vld [vmem:[%s223_s30 + $0x8] sm:$0xff]   ;;  %s678_s30 = sshll.u32 %s898_s22, 9  ;;  %s779_s22 = scalar_lea.vmem %s1018_s23, 512 }
  0x19   : > { %s1016_s6 = scalar_lea.hbm %s1068_s5, %s678_s30  ;;  %p780_p11 = scmp.ne.s32.totalorder %s1018_s23, %s779_s22 }
  0x1a   : > { %684 = vmatpush3.bf16.msra.mxu1 %v768_v15  ;;  %p787_p1 = scmp.lt.s32.totalorder %s785_s7, %s779_s22 }
  0x1b   : > { %315 = vmatpush1.bf16.msra.mxu0 %v760_v9  ;;  %685 = vmatprep.subr.bf16.mxu1 %v769_v16  ;;  %p781_p12 = pnand %p780_p11, %p915_p5 }
  0x1c   : > { %p788_p2 = por %p787_p1, %p786_p0 }
  0x1d   : > { %p782_p13 = pneg %p781_p12 }
  0x1e   : > { %654 = vmatmul.mubr.msk.bf16.vlgmr.msra.gmra.mrb[0].mxu0 %vm301_vm0, %v761_v14  ;;  %686 = vmatpush3.bf16.msra.mxu1 %v770_v17 }
  0x1f   : > { %350 = vmatprep.mubr.bf16.mxu0 %v843_v2  ;;  %687 = vmatprep.subr.bf16.mxu1 %v771_v18  ;;  %p789_p3 = pnand %p788_p2, %p782_p13 }
  0x22   : > { %688 = vmatpush3.bf16.msra.mxu1 %v772_v20 }
  0x23   : > { %689 = vmatprep.subr.bf16.mxu1 %v773_v21 }
  0x26   : > { %655 = vmatmul.mubr.msk.bf16.gmra.mrb[4].mxu0 %vm301_vm0, %v762_v19  ;;  %690 = vmatpush3.bf16.msra.mxu1 %v774_v22 }
  0x27   : > { %691 = vmatprep.subr.bf16.mxu1 %v775_v23 }
  0x2a   : > { %692 = vmatpush3.bf16.msra.mxu1 %v776_v24 }
  0x2b   : > { %693 = vmatprep.subr.bf16.mxu1 %v777_v25 }
  0x2e   : > { %694 = vmatpush3.bf16.msra.mxu1 %v778_v26 }
  0xf1   : > { %v342_v34 = vpop.f32.mrb[0].mxu0 }
  0xf2   : > { %v343_v35 = vadd.f32 %v342_v34, %v244_v32  ;;  %v344_v36 = vpop.f32.mrb[1].mxu0 }
  0xf3   : > { %v345_v37 = vadd.f32 %v344_v36, %v248_v33  ;;  %v346_v38 = vpop.f32.mrb[2].mxu0 }
  0xf4   : > { %v347_v39 = vadd.f32 %v346_v38, %v244_v32  ;;  %v348_v40 = vpop.f32.mrb[3].mxu0  ;;  %v361_v42 = vmax.f32 %v343_v35, 0.0 }
  0xf5   : > { %v349_v41 = vadd.f32 %v348_v40, %v248_v33  ;;  %v362_v44 = vmax.f32 %v345_v37, 0.0 }
  0xf6   : > { %v363_v43 = vmax.f32 %v347_v39, 0.0 }
  0xf7   : > { %v364_v45 = vmax.f32 %v349_v41, 0.0 }
  0xf8   : > { %v369_v46 = vpack.c.bf16 %v363_v43, %v361_v42 }
  0xf9   : > { %v352_v47 = vpop.f32.mrb[4].mxu0  ;;  %v370_v48 = vpack.c.bf16 %v364_v45, %v362_v44 }
  0xfa   : > { %v353_v49 = vadd.f32 %v352_v47, %v244_v32  ;;  %v354_v50 = vpop.f32.mrb[5].mxu0 }
  0xfb   : > { %v355_v51 = vadd.f32 %v354_v50, %v248_v33  ;;  %v356_v52 = vpop.f32.mrb[6].mxu0  ;;  %540 = vmatprep.mubr.bf16.mxu1 %v370_v48 }
  0xfc   : > { %v357_v53 = vadd.f32 %v356_v52, %v244_v32  ;;  %v358_v54 = vpop.f32.mrb[7].mxu0  ;;  %541 = vmatmul.mubr.bf16.vlgmr.msra.gmra.mrb[0].mxu1 %v369_v46  ;;  %v365_v56 = vmax.f32 %v353_v49, 0.0 }
  0xfd   : > { %v359_v55 = vadd.f32 %v358_v54, %v248_v33  ;;  %v366_v58 = vmax.f32 %v355_v51, 0.0 }
  0xfe   : > { %v367_v57 = vmax.f32 %v357_v53, 0.0 }
  0xff   : > { %v368_v59 = vmax.f32 %v359_v55, 0.0 }
 0x100   : > { %v371_v60 = vpack.c.bf16 %v367_v57, %v365_v56 }
 0x101   : > { %v372_v61 = vpack.c.bf16 %v368_v59, %v366_v58 }
 0x103   : > { %548 = vmatprep.mubr.bf16.mxu1 %v372_v61 }
 0x104   : > { %549 = vmatmul.mubr.bf16.gmra.mrb[4].mxu1 %v371_v60 }
 0x1cf   : > { %v695_v62 = vpop.f32.mrb[0].mxu1 }
 0x1d0   : > { %v696_v0 = vpop.f32.mrb[1].mxu1 }
 0x1d1   : > { %v697_v1 = vadd.f32 %v696_v0, %v695_v62  ;;  %v698_v2 = vpop.f32.mrb[2].mxu1 }
 0x1d2   : > { %v699_v3 = vpop.f32.mrb[3].mxu1 }
 0x1d3   : > { %v543_v4 = vadd.f32 %v697_v1, %v656_v63  ;;  %v700_v5 = vadd.f32 %v699_v3, %v698_v2 }
 0x1d5   : > { %557 = vst.msk [vmem:[%s218_s17] sm:$0xff] %vm301_vm0, %v543_v4  ;;  %v546_v6 = vadd.f32 %v700_v5, %v656_v63 }
 0x1d7   : > { %558 = vst.msk [vmem:[%s218_s17 + $0x8] sm:$0xff] %vm301_vm0, %v546_v6  ;;  %v701_v7 = vpop.f32.mrb[4].mxu1 }
 0x1d8   : > { %v702_v8 = vpop.f32.mrb[5].mxu1 }
 0x1d9   : > { %v703_v9 = vadd.f32 %v702_v8, %v701_v7  ;;  %v704_v10 = vpop.f32.mrb[6].mxu1 }
 0x1da   : > { %v705_v11 = vpop.f32.mrb[7].mxu1 }
 0x1db   : > { %v551_v12 = vadd.f32 %v703_v9, %v656_v63  ;;  %v706_v13 = vadd.f32 %v705_v11, %v704_v10 }
 0x1dd   : > { %559 = vst.msk [vmem:[%s218_s17 + $0x10] sm:$0xff] %vm301_vm0, %v551_v12  ;;  %v554_v14 = vadd.f32 %v706_v13, %v656_v63 }
 0x1df   : > { %560 = vst.msk [vmem:[%s218_s17 + $0x18] sm:$0xff] %vm301_vm0, %v554_v14 }
 0x1e0   : > { %792 = shalt.err (!%p789_p3)
}
 0x1e1   : > { %s793_s11 = scalar_lea.hbm %s1016_s6, 512  ;;  %s797_s14 = scalar_lea.hbm %s1068_s5, 1024 }
 0x1e2   : > { %p794_p4 = scmp.ne.s32.totalorder %s1016_s6, %s793_s11  ;;  %p798_p9 = scmp.lt.u32.totalorder %s1016_s6, %s1068_s5 }
 0x1e3   : > { %p799_p10 = scmp.lt.u32.totalorder %s797_s14, %s793_s11  ;;  %p801_p12 = scmp.lt.u32.totalorder %s793_s11, %s1016_s6 }
 0x1e4   : > { %p795_p7 = pnand %p794_p4, %p915_p5 }
 0x1e5   : > { %p800_p11 = por %p799_p10, %p798_p9 }
 0x1e6   : > { %p796_p8 = pneg %p795_p7 }
 0x1e7   : > { %p802_p13 = por %p801_p12, %p800_p11 }
 0x1e9   : > { %p803_p0 = pnand %p802_p13, %p796_p8 }
 0x1eb   : > { %806 = shalt.err (!%p803_p0)
}
 0x1ec   : > { %s845_s17 = smov 128   ;;  %s846_s30 = smov 8  }
 0x1ed   : > { %707 = dma.vmem_to_hbm [thread:$0]  (%p915_p5), %s1018_s23, 512, %s1016_s6, %s1022_s8, %s845_s17, %s845_s17, %s846_s30  }
 0x1ee PF: > { %p713_p1 = scmp.ge.s32.totalorder %s841_s21, 2  ;;  %s590_s25 = sand.u32 1, %s829_s18  }
 0x1ef   : > { %s591_s26 = scalar_lea.sflag [#allocation3], %s590_s25 }
 0x1f0   : > { %p710_p2 = pnand %p713_p1, %p919_p6 }
 0x1f2   : > { %824 = dma.done.wait (!%p710_p2), %s591_s26, 512  }
 0x1f3   : > { %826 = vsyncadd (!%p710_p2), %s591_s26, 4294966784  ;;  %p15_p3 = scmp.ge.s32.totalorder %s902_s24, 4   ;;  %s1071_s18 = smov %s833_s19 }
 0x1f4   : > { %s1072_s19 = smov %s837_s20  ;;  %s1073_s20 = smov %s913_s27 }
 0x1f5   : > { %s1074_s21 = smov %s902_s24  ;;  %17 = sbr.rel (!%p15_p3) target bundleno = 3 (0x3), region = 75 }
 0x1fc   :  { %596 = vsyncpa [#allocation3], 1 }
 0x1fd   :  { %598 = vsyncpa [#allocation3 + $0x1], 1 }

</bundles_post_ra>
